<compile_context>
chip_gen: v7x
topology: tpu7x:2x2x1
jax: 0.10.0
libtpu: 0.0.40
codegen_flags: <defaults>
</compile_context>

<pallas_src>
import numpy as np
import jax
import jax.numpy as jnp
from jax.experimental import pallas as pl
from jax.experimental.pallas import tpu as pltpu


def _round_up(x, m):
    return (x + m - 1) // m * m


# --------------------------------------------------------------------------
# Kernel 1: encoder (init_embed -> L x residual-MLP+LayerNorm) + node/graph
# projections.  One grid step per batch element; outputs Ux and UxG = Ux + Gx.
# --------------------------------------------------------------------------
def nar_encoder_kernel(nodes_ref,
                       w_init_ref, b_init_ref,
                       w_lyr_ref, b_lyr_ref, gamma_ref, beta_ref,
                       w_node_ref, b_node_ref,
                       w_graph_ref, b_graph_ref,
                       ux_ref, uxg_ref):
    n_layers = w_lyr_ref.shape[0]

    x = nodes_ref[0]                                                       # (V, 2) f32
    h = jnp.dot(x, w_init_ref[...],
                preferred_element_type=jnp.float32) + b_init_ref[...]      # (V, D)

    # MLP encoder: h = LayerNorm(h + relu(h @ W + b)); matmuls in bf16,
    # residual / LayerNorm statistics in f32 (single-pass variance).
    for lyr in range(n_layers):
        u = jnp.dot(h.astype(jnp.bfloat16), w_lyr_ref[lyr],
                    preferred_element_type=jnp.float32) + b_lyr_ref[lyr]
        hr = h + jnp.maximum(u, 0.0)
        mu = jnp.mean(hr, axis=-1, keepdims=True)
        var = jnp.maximum(jnp.mean(hr * hr, axis=-1, keepdims=True) - mu * mu, 0.0)
        h = (hr - mu) * jax.lax.rsqrt(var + 1e-5) * gamma_ref[lyr] + beta_ref[lyr]

    ux = jnp.dot(h.astype(jnp.bfloat16), w_node_ref[...],
                 preferred_element_type=jnp.float32) + b_node_ref[...]     # (V, D)
    h_mean = jnp.mean(h, axis=0, keepdims=True)                            # (1, D)
    gx = jnp.dot(h_mean.astype(jnp.bfloat16), w_graph_ref[...],
                 preferred_element_type=jnp.float32) + b_graph_ref[...]    # (1, D)

    ux_ref[0] = ux
    uxg_ref[0] = ux + gx            # hoisted loop-invariant Ux + Gx


# --------------------------------------------------------------------------
# Kernel 2: edge head.  One grid step = TI source rows x all Vp targets.
#   d = relu(Ux[i] + Ux[j] + Gx) . (w0 - w1) + (b0 - b1)
#   log_p[i, j, 1] = -softplus(d)
# --------------------------------------------------------------------------
def nar_edge_logp1_kernel(ux_ref, uxg_ref, wdiff_ref, bdiff_ref, logp1_ref):
    ux_t = ux_ref[0]                        # (TI, D)  source rows Ux[i]
    uxg = uxg_ref[0]                        # (Vp, D)  Ux[j] + Gx for all targets
    wd = wdiff_ref[...]                     # (1, D)   w_edge[:,0] - w_edge[:,1]

    # One broadcasted add + relu for the whole tile (no per-row list/concat).
    e = jnp.maximum(ux_t[:, None, :] + uxg[None, :, :], 0.0)              # (TI, Vp, D)
    # Channel-difference logit via VPU multiply + reduce over D (no N=2 matmul).
    d = jnp.sum(e * wd[None, :, :], axis=-1) + bdiff_ref[...]             # (TI, Vp)
    # log_softmax(logits, axis=-1)[..., 1] == -softplus(l0 - l1)
    logp1_ref[0] = -(jnp.maximum(d, 0.0) + jnp.log(1.0 + jnp.exp(-jnp.abs(d))))


# --------------------------------------------------------------------------
# Wrapper: log_p[..., 1] of NARModel._inner, shape (B, V, V) float32.
# --------------------------------------------------------------------------
def nar_inner_logp1(nodes, params):
    B, V, _ = nodes.shape
    D = params["w_node"].shape[0]
    bf = jnp.bfloat16

    # ---- encoder pass (grid over batch) ------------------------------------
    enc_inputs = [
        nodes,
        params["w_init"], params["b_init"],
        params["w_lyr"].astype(bf), params["b_lyr"],
        params["gamma"], params["beta"],
        params["w_node"].astype(bf), params["b_node"],
        params["w_graph"].astype(bf), params["b_graph"],
    ]

    def full_spec(arr):
        nd = arr.ndim
        return pl.BlockSpec(arr.shape, lambda b, _nd=nd: (0,) * _nd)

    enc_in_specs = [pl.BlockSpec((1, V, 2), lambda b: (b, 0, 0))]
    enc_in_specs += [full_spec(a) for a in enc_inputs[1:]]

    ux, uxg = pl.pallas_call(
        nar_encoder_kernel,
        grid=(B,),
        in_specs=enc_in_specs,
        out_specs=(pl.BlockSpec((1, V, D), lambda b: (b, 0, 0)),
                   pl.BlockSpec((1, V, D), lambda b: (b, 0, 0))),
        out_shape=(jax.ShapeDtypeStruct((B, V, D), jnp.float32),
                   jax.ShapeDtypeStruct((B, V, D), jnp.float32)),
        compiler_params=pltpu.CompilerParams(
            dimension_semantics=("parallel",),
            vmem_limit_bytes=32 * 1024 * 1024),
    )(*enc_inputs)

    # ---- tiling for the edge pass ------------------------------------------
    # Pad the node axis to a multiple of 128 so output stores are lane-dense;
    # padded source rows / target columns are sliced off afterwards (they never
    # contaminate real entries, so no -inf masking is required).
    Vp = _round_up(V, 128)
    TI = min(128, Vp)
    # Cap the (TI, Vp, D) f32 intermediate at ~16 MiB (v7x has only 64 MiB VMEM).
    while TI > 8 and TI * Vp * D * 4 > (16 << 20):
        TI //= 2
    # Vp is a multiple of 128 and TI a power of two <= 128, so Vp % TI == 0.
    n_tiles = Vp // TI

    if Vp != V:
        padding = ((0, 0), (0, Vp - V), (0, 0))
        ux_p = jnp.pad(ux, padding)
        uxg_p = jnp.pad(uxg, padding)
    else:
        ux_p, uxg_p = ux, uxg

    # Precompute the 2-class channel difference of the edge head on the host.
    wdiff = (params["w_edge"][:, 0] - params["w_edge"][:, 1]).reshape(1, D)
    wdiff = wdiff.astype(jnp.float32)
    bdiff = (params["b_edge"][0, 0] - params["b_edge"][0, 1]).reshape(1, 1)
    bdiff = bdiff.astype(jnp.float32)

    logp1 = pl.pallas_call(
        nar_edge_logp1_kernel,
        grid=(B, n_tiles),
        in_specs=[pl.BlockSpec((1, TI, D), lambda b, it: (b, it, 0)),
                  pl.BlockSpec((1, Vp, D), lambda b, it: (b, 0, 0)),
                  pl.BlockSpec((1, D), lambda b, it: (0, 0)),
                  pl.BlockSpec((1, 1), lambda b, it: (0, 0))],
        out_specs=pl.BlockSpec((1, TI, Vp), lambda b, it: (b, it, 0)),
        out_shape=jax.ShapeDtypeStruct((B, Vp, Vp), jnp.float32),
        compiler_params=pltpu.CompilerParams(
            dimension_semantics=("parallel", "parallel"),
            vmem_limit_bytes=32 * 1024 * 1024),
    )(ux_p, uxg_p, wdiff, bdiff)

    return logp1[:, :V, :V]


# --------------------------------------------------------------------------
# Deterministic parameter init (shapes from NARModel.__init__)
# --------------------------------------------------------------------------
def init_params(key, embedding_dim, n_encode_layers):
    D, L = embedding_dim, n_encode_layers
    ks = jax.random.split(key, 10)

    def lin_w(k, fan_in, fan_out):
        bound = 1.0 / np.sqrt(fan_in)
        return jax.random.uniform(k, (fan_in, fan_out), jnp.float32, -bound, bound)

    def lin_b(k, fan_in, shape):
        bound = 1.0 / np.sqrt(fan_in)
        return jax.random.uniform(k, shape, jnp.float32, -bound, bound)

    lw = jax.random.split(ks[2], L)
    lb = jax.random.split(ks[3], L)
    return {
        # init_embed: Linear(2, D)
        "w_init": lin_w(ks[0], 2, D),
        "b_init": lin_b(ks[1], 2, (1, D)),
        # encoder (MLP variant): L x Linear(D, D) + LayerNorm(D)
        "w_lyr": jnp.stack([lin_w(lw[l], D, D) for l in range(L)]),
        "b_lyr": jnp.stack([lin_b(lb[l], D, (1, D)) for l in range(L)]),
        "gamma": jnp.ones((L, 1, D), jnp.float32),
        "beta": jnp.zeros((L, 1, D), jnp.float32),
        # project_node_emb / project_graph_emb: Linear(D, D)
        "w_node": lin_w(ks[4], D, D),
        "b_node": lin_b(ks[5], D, (1, D)),
        "w_graph": lin_w(ks[6], D, D),
        "b_graph": lin_b(ks[7], D, (1, D)),
        # edge_pred: Linear(D, 2)
        "w_edge": lin_w(ks[8], D, 2),
        "b_edge": lin_b(ks[9], D, (1, 2)),
    }


# --------------------------------------------------------------------------
# Host-side glue: greedy (beam_size=1) search, tour cost, log-likelihood
# --------------------------------------------------------------------------
def _greedy_decode(log_p1):
    """log_p1: (B, V, V) numpy.  Greedy tour from node 0, masking visited."""
    B, V, _ = log_p1.shape
    pis = np.zeros((B, V), dtype=np.int64)
    for b in range(B):
        visited = np.zeros(V, dtype=bool)
        visited[0] = True
        cur = 0
        for t in range(1, V):
            scores = log_p1[b, cur].copy()
            scores[visited] = -np.inf
            cur = int(np.argmax(scores))
            visited[cur] = True
            pis[b, t] = cur
    return pis


def _tour_cost(nodes, pi):
    coords = np.asarray(nodes)
    B = coords.shape[0]
    d = coords[np.arange(B)[:, None], pi]                 # (B, V, 2)
    return np.linalg.norm(d - np.roll(d, -1, axis=1), axis=-1).sum(axis=1)


def _calc_log_likelihood(log_p1, pi):
    # log_p.gather(2, a.unsqueeze(-1)).squeeze(-1).sum(1)
    B, V, _ = log_p1.shape
    terms = log_p1[np.arange(B)[:, None], np.arange(V)[None, :], pi]
    assert np.all(terms > -1000), "Logprobs should not be -inf"
    return terms.sum(axis=1)


def nar_forward(nodes, graph, params, return_pi=False):
    # graph (negative adjacency) is unused: mask_graph=False, MLP encoder.
    log_p1 = nar_inner_logp1(nodes, params)
    jax.block_until_ready(log_p1)
    lp = np.asarray(log_p1)
    pi = _greedy_decode(lp)
    cost = _tour_cost(nodes, pi)
    ll = _calc_log_likelihood(lp, pi)
    if return_pi:
        return jnp.asarray(cost), jnp.asarray(ll), jnp.asarray(pi)
    return jnp.asarray(cost), jnp.asarray(ll)


# --------------------------------------------------------------------------
if __name__ == "__main__":
    B, V, D, L = 2, 8, 32, 2          # batch, nodes, embedding_dim, n_encode_layers

    key = jax.random.PRNGKey(0)
    k_nodes, k_params = jax.random.split(key)
    nodes = jax.random.uniform(k_nodes, (B, V, 2), jnp.float32)
    # negative adjacency matrices (True where edge is absent); unused by this config.
    graph = jnp.zeros((B, V, V), dtype=jnp.bool_)

    params = init_params(k_params, D, L)

    cost, ll = nar_forward(nodes, graph, params)
    jax.block_until_ready((cost, ll))

    assert cost.shape == (B,) and ll.shape == (B,)
    print("KERNEL_OK")
</pallas_src>

<mosaic_0001>
module attributes {stable_mosaic.version = 11 : i64} {
  func.func @nar_encoder_kernel(%arg0: i32, %arg1: memref<1x8x2xf32, #tpu.memory_space<vmem>>, %arg2: memref<2x32xf32, #tpu.memory_space<vmem>>, %arg3: memref<1x32xf32, #tpu.memory_space<vmem>>, %arg4: memref<2x32x32xbf16, #tpu.memory_space<vmem>>, %arg5: memref<2x1x32xf32, #tpu.memory_space<vmem>>, %arg6: memref<2x1x32xf32, #tpu.memory_space<vmem>>, %arg7: memref<2x1x32xf32, #tpu.memory_space<vmem>>, %arg8: memref<32x32xbf16, #tpu.memory_space<vmem>>, %arg9: memref<1x32xf32, #tpu.memory_space<vmem>>, %arg10: memref<32x32xbf16, #tpu.memory_space<vmem>>, %arg11: memref<1x32xf32, #tpu.memory_space<vmem>>, %arg12: memref<1x8x32xf32, #tpu.memory_space<vmem>>, %arg13: memref<1x8x32xf32, #tpu.memory_space<vmem>>) attributes {dimension_semantics = [#tpu.dimension_semantics<parallel>], iteration_bounds = array<i64: 2>, scalar_prefetch = 0 : i64, scratch_operands = 0 : i64, tpu.core_type = #tpu.core_type<tc>, window_params = [{transform_indices = @transform_0, window_bounds = array<i64: 1, 8, 2>}, {pipeline_mode = #tpu.pipeline_mode<synchronous>, transform_indices = @transform_1, window_bounds = array<i64: 2, 32>}, {pipeline_mode = #tpu.pipeline_mode<synchronous>, transform_indices = @transform_2, window_bounds = array<i64: 1, 32>}, {pipeline_mode = #tpu.pipeline_mode<synchronous>, transform_indices = @transform_3, window_bounds = array<i64: 2, 32, 32>}, {pipeline_mode = #tpu.pipeline_mode<synchronous>, transform_indices = @transform_4, window_bounds = array<i64: 2, 1, 32>}, {pipeline_mode = #tpu.pipeline_mode<synchronous>, transform_indices = @transform_5, window_bounds = array<i64: 2, 1, 32>}, {pipeline_mode = #tpu.pipeline_mode<synchronous>, transform_indices = @transform_6, window_bounds = array<i64: 2, 1, 32>}, {pipeline_mode = #tpu.pipeline_mode<synchronous>, transform_indices = @transform_7, window_bounds = array<i64: 32, 32>}, {pipeline_mode = #tpu.pipeline_mode<synchronous>, transform_indices = @transform_8, window_bounds = array<i64: 1, 32>}, {pipeline_mode = #tpu.pipeline_mode<synchronous>, transform_indices = @transform_9, window_bounds = array<i64: 32, 32>}, {pipeline_mode = #tpu.pipeline_mode<synchronous>, transform_indices = @transform_10, window_bounds = array<i64: 1, 32>}, {transform_indices = @transform_11, window_bounds = array<i64: 1, 8, 32>}, {transform_indices = @transform_12, window_bounds = array<i64: 1, 8, 32>}]} {
    %c0 = arith.constant 0 : index
    %c0_0 = arith.constant 0 : index
    %c0_1 = arith.constant 0 : index
    %0 = vector.load %arg1[%c0, %c0_0, %c0_1] : memref<1x8x2xf32, #tpu.memory_space<vmem>>, vector<1x8x2xf32>
    %1 = vector.shape_cast %0 : vector<1x8x2xf32> to vector<8x2xf32>
    %c0_2 = arith.constant 0 : index
    %c0_3 = arith.constant 0 : index
    %2 = vector.load %arg2[%c0_2, %c0_3] : memref<2x32xf32, #tpu.memory_space<vmem>>, vector<2x32xf32>
    %cst = arith.constant dense<0.000000e+00> : vector<8x32xf32>
    %3 = tpu.matmul %1, %2, %cst {dimension_numbers = #tpu.dot_dimension_numbers<[1], [0], [0], [1], [0, 0, 1, 1], [], []>} : vector<8x2xf32>, vector<2x32xf32>, vector<8x32xf32> -> vector<8x32xf32>
    %c0_4 = arith.constant 0 : index
    %c0_5 = arith.constant 0 : index
    %4 = vector.load %arg3[%c0_4, %c0_5] : memref<1x32xf32, #tpu.memory_space<vmem>>, vector<1x32xf32>
    %5 = vector.broadcast %4 : vector<1x32xf32> to vector<8x32xf32>
    %6 = arith.addf %3, %5 : vector<8x32xf32>
    %7 = arith.truncf %6 : vector<8x32xf32> to vector<8x32xbf16>
    %c0_6 = arith.constant 0 : index
    %c0_7 = arith.constant 0 : index
    %c0_8 = arith.constant 0 : index
    %8 = vector.load %arg4[%c0_6, %c0_7, %c0_8] : memref<2x32x32xbf16, #tpu.memory_space<vmem>>, vector<1x32x32xbf16>
    %9 = vector.shape_cast %8 : vector<1x32x32xbf16> to vector<32x32xbf16>
    %cst_9 = arith.constant dense<0.000000e+00> : vector<8x32xf32>
    %10 = tpu.matmul %7, %9, %cst_9 {dimension_numbers = #tpu.dot_dimension_numbers<[1], [0], [0], [1], [0, 0, 1, 1], [], []>} : vector<8x32xbf16>, vector<32x32xbf16>, vector<8x32xf32> -> vector<8x32xf32>
    %c0_10 = arith.constant 0 : index
    %c0_11 = arith.constant 0 : index
    %c0_12 = arith.constant 0 : index
    %11 = vector.load %arg5[%c0_10, %c0_11, %c0_12] : memref<2x1x32xf32, #tpu.memory_space<vmem>>, vector<1x1x32xf32>
    %12 = vector.shape_cast %11 : vector<1x1x32xf32> to vector<1x32xf32>
    %13 = vector.broadcast %12 : vector<1x32xf32> to vector<8x32xf32>
    %14 = arith.addf %10, %13 : vector<8x32xf32>
    %cst_13 = arith.constant 0.000000e+00 : f32
    %15 = vector.broadcast %cst_13 : f32 to vector<8x32xf32>
    %16 = arith.maximumf %14, %15 : vector<8x32xf32>
    %17 = arith.addf %6, %16 : vector<8x32xf32>
    %cst_14 = arith.constant dense<0.000000e+00> : vector<8xf32>
    %18 = vector.multi_reduction <add>, %17, %cst_14 [1] : vector<8x32xf32> to vector<8xf32>
    %19 = vector.shape_cast %18 : vector<8xf32> to vector<8x1xf32>
    %cst_15 = arith.constant 3.200000e+01 : f32
    %20 = vector.broadcast %cst_15 : f32 to vector<8x1xf32>
    %21 = arith.divf %19, %20 : vector<8x1xf32>
    %22 = arith.mulf %17, %17 : vector<8x32xf32>
    %cst_16 = arith.constant dense<0.000000e+00> : vector<8xf32>
    %23 = vector.multi_reduction <add>, %22, %cst_16 [1] : vector<8x32xf32> to vector<8xf32>
    %24 = vector.shape_cast %23 : vector<8xf32> to vector<8x1xf32>
    %cst_17 = arith.constant 3.200000e+01 : f32
    %25 = vector.broadcast %cst_17 : f32 to vector<8x1xf32>
    %26 = arith.divf %24, %25 : vector<8x1xf32>
    %27 = arith.mulf %21, %21 : vector<8x1xf32>
    %28 = arith.subf %26, %27 : vector<8x1xf32>
    %cst_18 = arith.constant 0.000000e+00 : f32
    %29 = vector.broadcast %cst_18 : f32 to vector<8x1xf32>
    %30 = arith.maximumf %28, %29 : vector<8x1xf32>
    %31 = vector.broadcast %21 : vector<8x1xf32> to vector<8x32xf32>
    %32 = arith.subf %17, %31 : vector<8x32xf32>
    %cst_19 = arith.constant 9.99999974E-6 : f32
    %33 = vector.broadcast %cst_19 : f32 to vector<8x1xf32>
    %34 = arith.addf %30, %33 : vector<8x1xf32>
    %35 = math.rsqrt %34 : vector<8x1xf32>
    %36 = vector.broadcast %35 : vector<8x1xf32> to vector<8x32xf32>
    %37 = arith.mulf %32, %36 : vector<8x32xf32>
    %c0_20 = arith.constant 0 : index
    %c0_21 = arith.constant 0 : index
    %c0_22 = arith.constant 0 : index
    %38 = vector.load %arg6[%c0_20, %c0_21, %c0_22] : memref<2x1x32xf32, #tpu.memory_space<vmem>>, vector<1x1x32xf32>
    %39 = vector.shape_cast %38 : vector<1x1x32xf32> to vector<1x32xf32>
    %40 = vector.broadcast %39 : vector<1x32xf32> to vector<8x32xf32>
    %41 = arith.mulf %37, %40 : vector<8x32xf32>
    %c0_23 = arith.constant 0 : index
    %c0_24 = arith.constant 0 : index
    %c0_25 = arith.constant 0 : index
    %42 = vector.load %arg7[%c0_23, %c0_24, %c0_25] : memref<2x1x32xf32, #tpu.memory_space<vmem>>, vector<1x1x32xf32>
    %43 = vector.shape_cast %42 : vector<1x1x32xf32> to vector<1x32xf32>
    %44 = vector.broadcast %43 : vector<1x32xf32> to vector<8x32xf32>
    %45 = arith.addf %41, %44 : vector<8x32xf32>
    %46 = arith.truncf %45 : vector<8x32xf32> to vector<8x32xbf16>
    %c1 = arith.constant 1 : index
    %c0_26 = arith.constant 0 : index
    %c0_27 = arith.constant 0 : index
    %47 = vector.load %arg4[%c1, %c0_26, %c0_27] : memref<2x32x32xbf16, #tpu.memory_space<vmem>>, vector<1x32x32xbf16>
    %48 = vector.shape_cast %47 : vector<1x32x32xbf16> to vector<32x32xbf16>
    %cst_28 = arith.constant dense<0.000000e+00> : vector<8x32xf32>
    %49 = tpu.matmul %46, %48, %cst_28 {dimension_numbers = #tpu.dot_dimension_numbers<[1], [0], [0], [1], [0, 0, 1, 1], [], []>} : vector<8x32xbf16>, vector<32x32xbf16>, vector<8x32xf32> -> vector<8x32xf32>
    %c1_29 = arith.constant 1 : index
    %c0_30 = arith.constant 0 : index
    %c0_31 = arith.constant 0 : index
    %50 = vector.load %arg5[%c1_29, %c0_30, %c0_31] : memref<2x1x32xf32, #tpu.memory_space<vmem>>, vector<1x1x32xf32>
    %51 = vector.shape_cast %50 : vector<1x1x32xf32> to vector<1x32xf32>
    %52 = vector.broadcast %51 : vector<1x32xf32> to vector<8x32xf32>
    %53 = arith.addf %49, %52 : vector<8x32xf32>
    %cst_32 = arith.constant 0.000000e+00 : f32
    %54 = vector.broadcast %cst_32 : f32 to vector<8x32xf32>
    %55 = arith.maximumf %53, %54 : vector<8x32xf32>
    %56 = arith.addf %45, %55 : vector<8x32xf32>
    %cst_33 = arith.constant dense<0.000000e+00> : vector<8xf32>
    %57 = vector.multi_reduction <add>, %56, %cst_33 [1] : vector<8x32xf32> to vector<8xf32>
    %58 = vector.shape_cast %57 : vector<8xf32> to vector<8x1xf32>
    %cst_34 = arith.constant 3.200000e+01 : f32
    %59 = vector.broadcast %cst_34 : f32 to vector<8x1xf32>
    %60 = arith.divf %58, %59 : vector<8x1xf32>
    %61 = arith.mulf %56, %56 : vector<8x32xf32>
    %cst_35 = arith.constant dense<0.000000e+00> : vector<8xf32>
    %62 = vector.multi_reduction <add>, %61, %cst_35 [1] : vector<8x32xf32> to vector<8xf32>
    %63 = vector.shape_cast %62 : vector<8xf32> to vector<8x1xf32>
    %cst_36 = arith.constant 3.200000e+01 : f32
    %64 = vector.broadcast %cst_36 : f32 to vector<8x1xf32>
    %65 = arith.divf %63, %64 : vector<8x1xf32>
    %66 = arith.mulf %60, %60 : vector<8x1xf32>
    %67 = arith.subf %65, %66 : vector<8x1xf32>
    %cst_37 = arith.constant 0.000000e+00 : f32
    %68 = vector.broadcast %cst_37 : f32 to vector<8x1xf32>
    %69 = arith.maximumf %67, %68 : vector<8x1xf32>
    %70 = vector.broadcast %60 : vector<8x1xf32> to vector<8x32xf32>
    %71 = arith.subf %56, %70 : vector<8x32xf32>
    %cst_38 = arith.constant 9.99999974E-6 : f32
    %72 = vector.broadcast %cst_38 : f32 to vector<8x1xf32>
    %73 = arith.addf %69, %72 : vector<8x1xf32>
    %74 = math.rsqrt %73 : vector<8x1xf32>
    %75 = vector.broadcast %74 : vector<8x1xf32> to vector<8x32xf32>
    %76 = arith.mulf %71, %75 : vector<8x32xf32>
    %c1_39 = arith.constant 1 : index
    %c0_40 = arith.constant 0 : index
    %c0_41 = arith.constant 0 : index
    %77 = vector.load %arg6[%c1_39, %c0_40, %c0_41] : memref<2x1x32xf32, #tpu.memory_space<vmem>>, vector<1x1x32xf32>
    %78 = vector.shape_cast %77 : vector<1x1x32xf32> to vector<1x32xf32>
    %79 = vector.broadcast %78 : vector<1x32xf32> to vector<8x32xf32>
    %80 = arith.mulf %76, %79 : vector<8x32xf32>
    %c1_42 = arith.constant 1 : index
    %c0_43 = arith.constant 0 : index
    %c0_44 = arith.constant 0 : index
    %81 = vector.load %arg7[%c1_42, %c0_43, %c0_44] : memref<2x1x32xf32, #tpu.memory_space<vmem>>, vector<1x1x32xf32>
    %82 = vector.shape_cast %81 : vector<1x1x32xf32> to vector<1x32xf32>
    %83 = vector.broadcast %82 : vector<1x32xf32> to vector<8x32xf32>
    %84 = arith.addf %80, %83 : vector<8x32xf32>
    %85 = arith.truncf %84 : vector<8x32xf32> to vector<8x32xbf16>
    %c0_45 = arith.constant 0 : index
    %c0_46 = arith.constant 0 : index
    %86 = vector.load %arg8[%c0_45, %c0_46] : memref<32x32xbf16, #tpu.memory_space<vmem>>, vector<32x32xbf16>
    %cst_47 = arith.constant dense<0.000000e+00> : vector<8x32xf32>
    %87 = tpu.matmul %85, %86, %cst_47 {dimension_numbers = #tpu.dot_dimension_numbers<[1], [0], [0], [1], [0, 0, 1, 1], [], []>} : vector<8x32xbf16>, vector<32x32xbf16>, vector<8x32xf32> -> vector<8x32xf32>
    %c0_48 = arith.constant 0 : index
    %c0_49 = arith.constant 0 : index
    %88 = vector.load %arg9[%c0_48, %c0_49] : memref<1x32xf32, #tpu.memory_space<vmem>>, vector<1x32xf32>
    %89 = vector.broadcast %88 : vector<1x32xf32> to vector<8x32xf32>
    %90 = arith.addf %87, %89 : vector<8x32xf32>
    %cst_50 = arith.constant dense<0.000000e+00> : vector<32xf32>
    %91 = vector.multi_reduction <add>, %84, %cst_50 [0] : vector<8x32xf32> to vector<32xf32>
    %92 = vector.shape_cast %91 : vector<32xf32> to vector<1x32xf32>
    %cst_51 = arith.constant 8.000000e+00 : f32
    %93 = vector.broadcast %cst_51 : f32 to vector<1x32xf32>
    %94 = arith.divf %92, %93 : vector<1x32xf32>
    %95 = arith.truncf %94 : vector<1x32xf32> to vector<1x32xbf16>
    %c0_52 = arith.constant 0 : index
    %c0_53 = arith.constant 0 : index
    %96 = vector.load %arg10[%c0_52, %c0_53] : memref<32x32xbf16, #tpu.memory_space<vmem>>, vector<32x32xbf16>
    %cst_54 = arith.constant dense<0.000000e+00> : vector<1x32xf32>
    %97 = tpu.matmul %95, %96, %cst_54 {dimension_numbers = #tpu.dot_dimension_numbers<[1], [0], [0], [1], [0, 0, 1, 1], [], []>} : vector<1x32xbf16>, vector<32x32xbf16>, vector<1x32xf32> -> vector<1x32xf32>
    %c0_55 = arith.constant 0 : index
    %c0_56 = arith.constant 0 : index
    %98 = vector.load %arg11[%c0_55, %c0_56] : memref<1x32xf32, #tpu.memory_space<vmem>>, vector<1x32xf32>
    %99 = arith.addf %97, %98 : vector<1x32xf32>
    %c0_57 = arith.constant 0 : index
    %c0_58 = arith.constant 0 : index
    %c0_59 = arith.constant 0 : index
    %100 = vector.load %arg12[%c0_57, %c0_58, %c0_59] : memref<1x8x32xf32, #tpu.memory_space<vmem>>, vector<1x8x32xf32>
    %101 = vector.shape_cast %100 : vector<1x8x32xf32> to vector<8x32xf32>
    %102 = vector.shape_cast %90 : vector<8x32xf32> to vector<1x8x32xf32>
    tpu.vector_store %arg12[%c0_57, %c0_58, %c0_59], %102 {strides = array<i32>} : memref<1x8x32xf32, #tpu.memory_space<vmem>>, vector<1x8x32xf32>,
    %103 = vector.broadcast %99 : vector<1x32xf32> to vector<8x32xf32>
    %104 = arith.addf %90, %103 : vector<8x32xf32>
    %c0_60 = arith.constant 0 : index
    %c0_61 = arith.constant 0 : index
    %c0_62 = arith.constant 0 : index
    %105 = vector.load %arg13[%c0_60, %c0_61, %c0_62] : memref<1x8x32xf32, #tpu.memory_space<vmem>>, vector<1x8x32xf32>
    %106 = vector.shape_cast %105 : vector<1x8x32xf32> to vector<8x32xf32>
    %107 = vector.shape_cast %104 : vector<8x32xf32> to vector<1x8x32xf32>
    tpu.vector_store %arg13[%c0_60, %c0_61, %c0_62], %107 {strides = array<i32>} : memref<1x8x32xf32, #tpu.memory_space<vmem>>, vector<1x8x32xf32>,
    return
  }
  func.func @transform_0(%arg0: i32) -> (i32, i32, i32) {
    %c0_i32 = arith.constant 0 : i32
    %c0_i32_0 = arith.constant 0 : i32
    %c0_i32_1 = arith.constant 0 : i32
    return %arg0, %c0_i32, %c0_i32_0 : i32, i32, i32
  }
  func.func @transform_1(%arg0: i32) -> (i32, i32) {
    %c0_i32 = arith.constant 0 : i32
    %c0_i32_0 = arith.constant 0 : i32
    %c0_i32_1 = arith.constant 0 : i32
    return %c0_i32, %c0_i32_0 : i32, i32
  }
  func.func @transform_2(%arg0: i32) -> (i32, i32) {
    %c0_i32 = arith.constant 0 : i32
    %c0_i32_0 = arith.constant 0 : i32
    %c0_i32_1 = arith.constant 0 : i32
    return %c0_i32, %c0_i32_0 : i32, i32
  }
  func.func @transform_3(%arg0: i32) -> (i32, i32, i32) {
    %c0_i32 = arith.constant 0 : i32
    %c0_i32_0 = arith.constant 0 : i32
    %c0_i32_1 = arith.constant 0 : i32
    %c0_i32_2 = arith.constant 0 : i32
    return %c0_i32, %c0_i32_0, %c0_i32_1 : i32, i32, i32
  }
  func.func @transform_4(%arg0: i32) -> (i32, i32, i32) {
    %c0_i32 = arith.constant 0 : i32
    %c0_i32_0 = arith.constant 0 : i32
    %c0_i32_1 = arith.constant 0 : i32
    %c0_i32_2 = arith.constant 0 : i32
    return %c0_i32, %c0_i32_0, %c0_i32_1 : i32, i32, i32
  }
  func.func @transform_5(%arg0: i32) -> (i32, i32, i32) {
    %c0_i32 = arith.constant 0 : i32
    %c0_i32_0 = arith.constant 0 : i32
    %c0_i32_1 = arith.constant 0 : i32
    %c0_i32_2 = arith.constant 0 : i32
    return %c0_i32, %c0_i32_0, %c0_i32_1 : i32, i32, i32
  }
  func.func @transform_6(%arg0: i32) -> (i32, i32, i32) {
    %c0_i32 = arith.constant 0 : i32
    %c0_i32_0 = arith.constant 0 : i32
    %c0_i32_1 = arith.constant 0 : i32
    %c0_i32_2 = arith.constant 0 : i32
    return %c0_i32, %c0_i32_0, %c0_i32_1 : i32, i32, i32
  }
  func.func @transform_7(%arg0: i32) -> (i32, i32) {
    %c0_i32 = arith.constant 0 : i32
    %c0_i32_0 = arith.constant 0 : i32
    %c0_i32_1 = arith.constant 0 : i32
    return %c0_i32, %c0_i32_0 : i32, i32
  }
  func.func @transform_8(%arg0: i32) -> (i32, i32) {
    %c0_i32 = arith.constant 0 : i32
    %c0_i32_0 = arith.constant 0 : i32
    %c0_i32_1 = arith.constant 0 : i32
    return %c0_i32, %c0_i32_0 : i32, i32
  }
  func.func @transform_9(%arg0: i32) -> (i32, i32) {
    %c0_i32 = arith.constant 0 : i32
    %c0_i32_0 = arith.constant 0 : i32
    %c0_i32_1 = arith.constant 0 : i32
    return %c0_i32, %c0_i32_0 : i32, i32
  }
  func.func @transform_10(%arg0: i32) -> (i32, i32) {
    %c0_i32 = arith.constant 0 : i32
    %c0_i32_0 = arith.constant 0 : i32
    %c0_i32_1 = arith.constant 0 : i32
    return %c0_i32, %c0_i32_0 : i32, i32
  }
  func.func @transform_11(%arg0: i32) -> (i32, i32, i32) {
    %c0_i32 = arith.constant 0 : i32
    %c0_i32_0 = arith.constant 0 : i32
    %c0_i32_1 = arith.constant 0 : i32
    return %arg0, %c0_i32, %c0_i32_0 : i32, i32, i32
  }
  func.func @transform_12(%arg0: i32) -> (i32, i32, i32) {
    %c0_i32 = arith.constant 0 : i32
    %c0_i32_0 = arith.constant 0 : i32
    %c0_i32_1 = arith.constant 0 : i32
    return %arg0, %c0_i32, %c0_i32_0 : i32, i32, i32
  }
}

</mosaic_0001>

<bundles_post_ra>
// kernel: tpu_custom_call.1
= control target key start
LH: loop header
LB: loop body
LE: loop exit
PB: predicated region body
PF: predicated region fallthrough
CT: control target
= control target key end

     0   :  { %s1812_s0 = inlined_call_operand.vmem [shape: f32[2,8,2], index: 0, kind: input, shape index: {}]   ;;  %s1813_s1 = inlined_call_operand.vmem [shape: f32[2,32], index: 1, kind: input, shape index: {}]   ;;  %s1814_s2 = inlined_call_operand.hbm [shape: f32[1,32], index: 2, kind: input, shape index: {}]   ;;  %s1815_s3 = inlined_call_operand.hbm [shape: bf16[2,32,32], index: 3, kind: input, shape index: {}]   ;;  %s1816_s4 = inlined_call_operand.hbm [shape: f32[2,1,32], index: 4, kind: input, shape index: {}]   ;;  %s1817_s5 = inlined_call_operand.vmem [shape: f32[2,1,32], index: 5, kind: input, shape index: {}]   ;;  %s1818_s6 = inlined_call_operand.vmem [shape: f32[2,1,32], index: 6, kind: input, shape index: {}]   ;;  %s1819_s7 = inlined_call_operand.vmem [shape: bf16[32,32], index: 7, kind: input, shape index: {}]   ;;  %s1820_s8 = inlined_call_operand.vmem [shape: f32[1,32], index: 8, kind: input, shape index: {}]   ;;  %s1821_s9 = inlined_call_operand.vmem [shape: bf16[32,32], index: 9, kind: input, shape index: {}]   ;;  %s1822_s10 = inlined_call_operand.vmem [shape: f32[1,32], index: 10, kind: input, shape index: {}]   ;;  %s1823_s11 = inlined_call_operand.hbm [shape: f32[2,8,32], index: 11, kind: output, shape index: {0}]   ;;  %s1824_s12 = inlined_call_operand.hbm [shape: f32[2,8,32], index: 12, kind: output, shape index: {1}]  }
   0x1   :  { %1835 = sst [smem:[#allocation21_spill]] %s1822_s10 }
   0x2   :  { %1836 = sst [smem:[#allocation22_spill]] %s1824_s12 }
   0x3   :  { %18 = vsyncpa [#allocation3], 0 }
   0x4   :  { %19 = vsyncpa [#allocation6], 0 }
   0x5   :  { %20 = vsyncpa [#allocation4], 0 }
   0x6   :  { %22 = vsyncpa [#allocation4 + $0x1], 0 }
   0x7   :  { %23 = vsyncpa [#allocation10], 0 }
   0x8   :  { %25 = vsyncpa [#allocation10 + $0x1], 0  ;;  %s1507_s21 = smov 0   ;;  %s1509_s22 = smov 0  }
   0x9   :  { %s1511_s23 = smov 0   ;;  %s1513_s24 = smov 0  }
   0xa LB: > { %1837 = sst [smem:[#allocation15_spill]] %s1417_s21  ;;  %s1528_s25 = sadd.s32 4294967295, %s1429_s24   ;;  %s1429_s24 = sphi %s1513_s24, %s1860_s24   ;;  %s1425_s23 = sphi %s1511_s23, %s1862_s23   ;;  %s1421_s22 = sphi %s1509_s22, %s1864_s22   ;;  %s1417_s21 = sphi %s1507_s21, %s1863_s21  }
   0xb   : > { %1838 = sst [smem:[#allocation16_spill]] %s1425_s23  ;;  %s1056_s26 = sadd.s32 4294967294, %s1429_s24  }
   0xc   : > { %1839 = sst [smem:[#allocation17_spill]] %s1429_s24  ;;  %s1532_s27 = sadd.s32 1, %s1429_s24  }
   0xd   : > { %1840 = sst [smem:[#allocation18_spill]] %s1532_s27  ;;  %s274_s28 = sadd.s32 1, %s1425_s23 }
   0xe   : > { %s271_s29 = ssub.s32 %s1429_s24, %s1532_s27  ;;  %p284_p0 = scmp.ne.s32.totalorder %s1425_s23, %s1421_s22 }
   0xf   : > { %p272_p1 = scmp.eq.s32.totalorder %s271_s29, 0  ;;  %p285_p2 = scmp.eq.s32.totalorder %s1528_s25, 1 }
  0x10   : > { %p290_p3 = scmp.ne.s32.totalorder %s1421_s22, %s1417_s21  ;;  %p291_p4 = scmp.eq.s32.totalorder %s1056_s26, 1 }
  0x11   : > { %s1543_s30 = scalar_select %p272_p1, %s1425_s23, %s274_s28  }
  0x12   : > { %p1545_p5 = por %p285_p2, %p284_p0  ;;  %p1549_p6 = por %p291_p4, %p290_p3 }
  0x13   : > { %1841 = sst [smem:[#allocation19_spill]] %s1543_s30  ;;  %p1057_p7 = scmp.ge.s32.totalorder %s1429_s24, 1 }
  0x14   : > { %s1842_s13 = scalar_select %p1545_p5, 1, 0 }
  0x15   : > { %s1843_s14 = scalar_select %p1549_p6, 1, 0 }
  0x16   : > { %p324_p8 = scmp.lt.s32.totalorder %s1429_s24, 3  ;;  %p1829_p9 = scmp.eq.s32.totalorder %s1528_s25, 0 }
  0x17   : > { %1844 = sst [smem:[#allocation20_spill]] %s1843_s14  ;;  %s1431_s16 = smov [#allocation5]  }
  0x18   : > { %p1556_p10 = pnand %p1057_p7, %p324_p8  ;;  %s350_s17 = sshll.u32 %s1431_s16, 4  ;;  %s1562_s17 = int_to_ptr.vmem [resolvable:$true] %s350_s17 }
  0x19   : > { %s1432_s19 = smov [#allocation2]   ;;  %s1433_s26 = smov [#allocation7]  }
  0x1a   : > { %s1845_s15 = scalar_select %p1556_p10, 1, 0 }
  0x1b   : > { %p1166_p11 = pneg %p1556_p10  ;;  %s340_s20 = sshll.u32 %s1432_s19, 4  ;;  %s1570_s20 = int_to_ptr.vmem [resolvable:$true] %s340_s20 }
  0x1c   : > { %s1572_s28 = sshll.u32 %s1433_s26, 4  ;;  %s1243_s16 = scalar_lea.hbm %s1815_s3, 512  ;;  %s364_s28 = int_to_ptr.vmem [resolvable:$true] %s1572_s28 }
  0x1d   : > { %p1566_p12 = pnand %p1829_p9, %p1166_p11  ;;  %p1244_p13 = scmp.ne.s32.totalorder %s1815_s3, %s1243_s16 }
  0x1e   : > { %p1250_p3 = scmp.lt.u32.totalorder %s1243_s16, %s1815_s3 }
  0x1f   : > { %p1582_p0 = pneg %p1566_p12 }
  0x21   : > { %p1246_p1 = pnand %p1582_p0, %p1244_p13 }
  0x23   : > { %p1247_p2 = pneg %p1246_p1 }
  0x25   : > { %p1252_p4 = pnand %p1250_p3, %p1247_p2 }
  0x27   : > { %1255 = shalt.err (!%p1252_p4)
}
  0x28   : > { %s1256_s23 = scalar_lea.vmem %s1562_s17, 512  ;;  %p1264_p9 = scmp.lt.s32.totalorder %s1562_s17, %s1562_s17 }
  0x29   : > { %p1257_p7 = scmp.ne.s32.totalorder %s1562_s17, %s1256_s23  ;;  %p1265_p6 = scmp.lt.s32.totalorder %s1256_s23, %s1256_s23 }
  0x2b   : > { %p1259_p8 = pnand %p1257_p7, %p1582_p0  ;;  %p1266_p13 = por %p1265_p6, %p1264_p9 }
  0x2d   : > { %p1260_p11 = pneg %p1259_p8 }
  0x2f   : > { %p1267_p1 = pnand %p1266_p13, %p1260_p11 }
  0x31   : > { %1270 = shalt.err (!%p1267_p1)
}
  0x32   : > { %s1434_s27 = smov 64   ;;  %s1435_s30 = smov 4  }
  0x33   : > { %1172 = dma.hbm_to_vmem [thread:$0]  (!%p1566_p12), %s1815_s3, 512, %s1562_s17, [#allocation6], %s1434_s27, %s1434_s27, %s1435_s30  }
  0x34   : > { %s1271_s21 = scalar_lea.hbm %s1814_s2, 16 }
  0x35   : > { %p1272_p6 = scmp.ne.s32.totalorder %s1814_s2, %s1271_s21  ;;  %p1278_p3 = scmp.lt.u32.totalorder %s1271_s21, %s1814_s2 }
  0x37   : > { %p1274_p9 = pnand %p1272_p6, %p1582_p0 }
  0x39   : > { %p1275_p2 = pneg %p1274_p9 }
  0x3b   : > { %p1280_p4 = pnand %p1278_p3, %p1275_p2 }
  0x3d   : > { %1283 = shalt.err (!%p1280_p4)
}
  0x3e   : > { %s1284_s17 = scalar_lea.vmem %s1570_s20, 16  ;;  %s1291_s12 = scalar_lea.vmem %s1570_s20, 32 }
  0x3f   : > { %p1285_p7 = scmp.ne.s32.totalorder %s1570_s20, %s1284_s17  ;;  %p1292_p13 = scmp.lt.s32.totalorder %s1570_s20, %s1570_s20 }
  0x40   : > { %p1293_p1 = scmp.lt.s32.totalorder %s1291_s12, %s1284_s17 }
  0x41   : > { %p1287_p8 = pnand %p1285_p7, %p1582_p0 }
  0x42   : > { %p1294_p6 = por %p1293_p1, %p1292_p13 }
  0x43   : > { %p1288_p11 = pneg %p1287_p8 }
  0x45   : > { %p1295_p9 = pnand %p1294_p6, %p1288_p11 }
  0x47   : > { %1298 = shalt.err (!%p1295_p9)
}
  0x48   : > { %1169 = dma.hbm_to_vmem [thread:$0]  (!%p1566_p12), %s1814_s2, 16, %s1570_s20, [#allocation3]  }
  0x49   : > { %s1299_s30 = scalar_lea.hbm %s1816_s4, 32 }
  0x4a   : > { %p1300_p2 = scmp.ne.s32.totalorder %s1816_s4, %s1299_s30  ;;  %p1306_p7 = scmp.lt.u32.totalorder %s1299_s30, %s1816_s4 }
  0x4c   : > { %p1302_p3 = pnand %p1300_p2, %p1582_p0 }
  0x4e   : > { %p1303_p4 = pneg %p1302_p3 }
  0x50   : > { %p1308_p8 = pnand %p1306_p7, %p1303_p4 }
  0x52   : > { %1311 = shalt.err (!%p1308_p8)
}
  0x53   : > { %s1312_s23 = scalar_lea.vmem %s364_s28, 32  ;;  %p1320_p6 = scmp.lt.s32.totalorder %s364_s28, %s364_s28 }
  0x54   : > { %p1313_p11 = scmp.ne.s32.totalorder %s364_s28, %s1312_s23  ;;  %p1321_p9 = scmp.lt.s32.totalorder %s1312_s23, %s1312_s23 }
  0x56   : > { %p1315_p13 = pnand %p1313_p11, %p1582_p0  ;;  %p1322_p5 = por %p1321_p9, %p1320_p6 }
  0x58   : > { %p1316_p1 = pneg %p1315_p13 }
  0x5a   : > { %p1323_p10 = pnand %p1322_p5, %p1316_p1 }
  0x5c   : > { %1326 = shalt.err (!%p1323_p10)
}
  0x5d   : > { %s1436_s20 = smov 16   ;;  %s1437_s17 = smov 1  }
  0x5e   : > { %1175 = dma.hbm_to_vmem [thread:$0]  (!%p1566_p12), %s1816_s4, 32, %s364_s28, [#allocation6], %s1436_s20, %s1436_s20, %s1437_s17  }
  0x5f   : > { %p1848_p2 = scmp.ne.s32.totalorder %s1845_s15, 0 }
  0x60   : > { %p1849_p3 = scmp.eq.s32.totalorder (!%p1848_p2), %s1528_s25, 0 }
  0x61   : > { %404 = sbr.rel (%p1848_p2) target bundleno = 1371 (0x55b), region = 64 }
  0x68   : > { %1400 = dma.done.wait (%p1849_p3), [#allocation3], 16   ;;  %p1850_p0 = pmov %p1849_p3 }
  0x6a   : > { %1402 = vsyncadd (%p1850_p0), [#allocation3], 4294967280  ;;  %p1851_p5 = pmov %p1850_p0 }
  0x6b   : > { %p1852_p10 = pmov %p1850_p0 }
  0x6c   : > { %1404 = dma.done.wait (%p1851_p5), [#allocation6], 544  }
  0x6d   : > { %1406 = vsyncadd (%p1852_p10), [#allocation6], 4294966752  ;;  %p458_p4 = scmp.lt.s32.totalorder %s1528_s25, 1  ;;  %v1438_v0 = vmov 0.0   ;;  %vm1439_vm0 = vmmov 0   ;;  %vm476_vm1 = vcmask 1041408  }
  0x6e   : > { %1113 = vmatprep.subr.mxu0 %v1438_v0  ;;  %1115 = vmatprep.mubr.msk.f32.mxu0 %vm1439_vm0, %v1438_v0  ;;  %vm472_vm2 = vcmask 15360   ;;  %v464_v1 = vld [vmem:[%s1813_s1] sm:$0x3]  ;;  %v1231_v3 = vld [vmem:[#allocation5] sm:$0xff]   ;;  %v1069_v5 = vld [vmem:[#allocation2] ss:$0 sm:$0xff] }
  0x6f   : > { %s459_s14 = scalar_select %p458_p4, %s1528_s25, 1  ;;  %1118 = vmatprep.subr.bf16.mxu1 %v1438_v0  ;;  %1122 = vmatprep.mubr.msk.bf16.mxu1 %vm1439_vm0, %v1438_v0  ;;  %v1232_v4 = vld [vmem:[#allocation5 + $0x8] sm:$0xff]   ;;  %vm574_vm3 = vcmask 261120   ;;  %v1072_v10 = vld [vmem:[#allocation7] ss:$0 sm:$0xff]  ;;  %v1233_v21 = vld [vmem:[#allocation5 + $0x10] sm:$0xff]  }
  0x70   : > { %1114 = vmatpush3.msk.msra.mxu0 %vm476_vm1, %v464_v1  ;;  %1119 = vmatpush3.bf16.msra.mxu1 %v1231_v3  ;;  %v1234_v22 = vld [vmem:[#allocation5 + $0x18] sm:$0xff]   ;;  %v1076_v33 = vld [vmem:[%s1817_s5] ss:$0 sm:$0xff]  ;;  %v1078_v39 = vld [vmem:[#allocation7 + $0x1] ss:$0 sm:$0xff]  ;;  %s1717_s27 = sand.u32 1, %s1421_s22  }
  0x71   : > { %s1068_s15 = sshll.u32 %s459_s14, 3  ;;  %1126 = vmatprep.subr.bf16.mxu0 %v1438_v0  ;;  %1120 = vmatprep.subr.bf16.mxu1 %v1438_v0  ;;  %v1077_v35 = vld [vmem:[%s1818_s6] ss:$0 sm:$0xff]  ;;  %v1236_v51 = vld [vmem:[%s1819_s7 + $0x8] sm:$0xff]   ;;  %v1083_v1 = vld [vmem:[%s1817_s5 + $0x1] ss:$0 sm:$0xff] }
  0x72   : > { %s461_s21 = scalar_lea.vmem %s1812_s0, %s1068_s15  ;;  %v1235_v50 = vld [vmem:[%s1819_s7] sm:$0xff]   ;;  %v1238_v53 = vld [vmem:[%s1821_s9 + $0x8] sm:$0xff]   ;;  %s1066_s30 = sshll.u32 %s1717_s27, 3 }
  0x73   : > { %v463_v2 = vld [vmem:[%s461_s21] sm:$0xff]  ;;  %s1095_s19 = sshll.u32 %s1528_s25, 7  ;;  %s450_s26 = scalar_lea.vmem [#allocation8], %s1066_s30 }
  0x74   : > { %1116 = vmatmul.mubr.msk.f32.vlgmr.msra.gmra.mrb[0].mxu0 %vm472_vm2, %v463_v2  ;;  %1121 = vmatpush3.bf16.msra.mxu1 %v1232_v4  ;;  %v1237_v52 = vld [vmem:[%s1821_s9] sm:$0xff]   ;;  %s921_s23 = sshll.u32 %s450_s26, 4  ;;  %s1731_s12 = scalar_lea.hbm %s1823_s11, %s1095_s19  ;;  %s1733_s23 = int_to_ptr.vmem [resolvable:$true] %s921_s23 }
  0x75   : > { %1130 = vmatprep.mubr.msk.bf16.mxu0 %vm1439_vm0, %v1438_v0  ;;  %1134 = vmatprep.subr.bf16.mxu1 %v1438_v0  ;;  %s903_s10 = scalar_lea.sflag [#allocation4], %s1717_s27  ;;  %s1327_s14 = scalar_lea.vmem %s1733_s23, 128 }
  0x76   : > { %1127 = vmatpush3.bf16.msra.mxu0 %v1233_v21  ;;  %p1328_p12 = scmp.ne.s32.totalorder %s1733_s23, %s1327_s14  ;;  %p1853_p7 = scmp.ne.s32.totalorder %s1842_s13, 0 }
  0x77   : > { %1128 = vmatprep.subr.bf16.mxu0 %v1438_v0  ;;  %s1440_s15 = smov [#allocation8]  }
  0x78   : > { %p1329_p8 = pnand %p1328_p12, %p1853_p7  ;;  %s1331_s18 = sshll.u32 %s1440_s15, 4  ;;  %s1332_s18 = int_to_ptr.vmem [resolvable:$false] %s1331_s18 }
  0x79   : > { %s1333_s28 = scalar_lea.vmem %s1332_s18, 256  ;;  %p1334_p13 = scmp.lt.s32.totalorder %s1733_s23, %s1332_s18 }
  0x7a   : > { %1129 = vmatpush3.bf16.msra.mxu0 %v1234_v22  ;;  %p1330_p11 = pneg %p1329_p8  ;;  %p1335_p1 = scmp.lt.s32.totalorder %s1333_s28, %s1327_s14 }
  0x7b   : > { %1142 = vmatprep.subr.bf16.mxu0 %v1438_v0 }
  0x7c   : > { %p1336_p6 = por %p1335_p1, %p1334_p13 }
  0x7e   : > { %p1337_p9 = pnand %p1336_p6, %p1330_p11 }
 0x147   : > { %v546_v6 = vpop.f32.mrb[0].mxu0 }
 0x148   : > { %v547_v7 = vadd.f32 %v1069_v5, %v546_v6  ;;  %v1117_v8 = vpop.f32.mrb[1].mxu0 }
 0x14a   : > { %v550_v9 = vpack.c.bf16 %v547_v7, %v547_v7 }
 0x14c   : > { %1123 = vmatmul.mubr.msk.bf16.vlgmr.msra.gmra.mrb[0].mxu1 %vm574_vm3, %v550_v9 }
 0x14d   : > { %1138 = vmatprep.mubr.msk.bf16.mxu1 %vm1439_vm0, %v1438_v0  ;;  %1135 = vmatpush3.bf16.msra.mxu1 %v1235_v50 }
 0x14e   : > { %1136 = vmatprep.subr.bf16.mxu1 %v1438_v0 }
 0x151   : > { %1137 = vmatpush3.bf16.msra.mxu1 %v1236_v51 }
 0x21f   : > { %v612_v11 = vpop.f32.mrb[0].mxu1 }
 0x220   : > { %v613_v12 = vadd.f32 %v1072_v10, %v612_v11  ;;  %v1124_v13 = vpop.f32.mrb[1].mxu1 }
 0x221   : > { %v615_v14 = vpop.f32.mrb[2].mxu1 }
 0x222   : > { %v618_v15 = vmax.f32 %v613_v12, 0.0  ;;  %v1125_v16 = vpop.f32.mrb[3].mxu1 }
 0x224   : > { %v619_v17 = vadd.f32 %v618_v15, %v547_v7  ;;  %v1086_v15 = vld [vmem:[%s1820_s8] ss:$0 sm:$0xff] }
 0x226   : > { %v620_v18 = vsel %vm574_vm3, %v619_v17, 0.0  ;;  %v625_v19 = vmul.f32 %v619_v17, %v619_v17 }
 0x227   : > { %621 = vadd.xlane.f32.xlu0 %v620_v18 }
 0x228   : > { %v626_v20 = vsel %vm574_vm3, %v625_v19, 0.0 }
 0x22b   : > { %627 = vadd.xlane.f32.xlu0 %v626_v20 }
 0x2b4   : > { %v622_v23 = vpop.xlane.xlu0 %621 }
 0x2b5   : > { %v624_v24 = vmul.f32 0.03125, %v622_v23 }
 0x2b7   : > { %v630_v26 = vmul.f32 %v624_v24, %v624_v24  ;;  %v633_v31 = vsub.f32 %v619_v17, %v624_v24 }
 0x2b8   : > { %v628_v25 = vpop.xlane.xlu0 %627 }
 0x2b9   : > { %v629_v27 = vmul.f32 0.03125, %v628_v25 }
 0x2bb   : > { %v631_v28 = vsub.f32 %v629_v27, %v630_v26 }
 0x2bd   : > { %v632_v29 = vmax.f32 %v631_v28, 0.0 }
 0x2bf   : > { %v634_v30 = vadd.f32 1e-05, %v632_v29 }
 0x2c1   : > { %1239 = vrsqrt.f32 %v634_v30 }
 0x2cb   : > { %v1240_v32 = vpop.eup %1239 }
 0x2cc   : > { %v636_v34 = vmul.f32 %v1240_v32, %v633_v31 }
 0x2ce   : > { %v644_v36 = vmul.f32 %v1076_v33, %v636_v34 }
 0x2d0   : > { %v652_v37 = vadd.f32 %v1077_v35, %v644_v36 }
 0x2d2   : > { %v653_v38 = vpack.c.bf16 %v652_v37, %v652_v37 }
 0x2d4   : > { %1131 = vmatmul.mubr.msk.bf16.vlgmr.msra.gmra.mrb[4].mxu0 %vm574_vm3, %v653_v38 }
 0x2d5   : > { %1146 = vmatprep.mubr.msk.bf16.mxu0 %vm1439_vm0, %v1438_v0  ;;  %1143 = vmatpush3.bf16.msra.mxu0 %v1237_v52 }
 0x2d6   : > { %1144 = vmatprep.subr.bf16.mxu0 %v1438_v0  ;;  %v1085_v0 = vld [vmem:[%s1818_s6 + $0x1] ss:$0 sm:$0xff] }
 0x2d9   : > { %1145 = vmatpush3.bf16.msra.mxu0 %v1238_v53 }
 0x3a7   : > { %v716_v40 = vpop.f32.mrb[4].mxu0 }
 0x3a8   : > { %v717_v41 = vadd.f32 %v1078_v39, %v716_v40  ;;  %v1132_v42 = vpop.f32.mrb[5].mxu0 }
 0x3a9   : > { %v719_v43 = vpop.f32.mrb[6].mxu0 }
 0x3aa   : > { %v722_v44 = vmax.f32 %v717_v41, 0.0  ;;  %v1133_v45 = vpop.f32.mrb[7].mxu0 }
 0x3ac   : > { %v723_v46 = vadd.f32 %v722_v44, %v652_v37 }
 0x3ae   : > { %v724_v47 = vsel %vm574_vm3, %v723_v46, 0.0  ;;  %v728_v48 = vmul.f32 %v723_v46, %v723_v46 }
 0x3af   : > { %725 = vadd.xlane.f32.xlu1 %v724_v47 }
 0x3b0   : > { %v729_v49 = vsel %vm574_vm3, %v728_v48, 0.0 }
 0x3b3   : > { %730 = vadd.xlane.f32.xlu1 %v729_v49 }
 0x43c   : > { %v726_v54 = vpop.xlane.xlu1 %725 }
 0x43d   : > { %v727_v55 = vmul.f32 0.03125, %v726_v54 }
 0x43f   : > { %v733_v57 = vmul.f32 %v727_v55, %v727_v55  ;;  %v736_v62 = vsub.f32 %v723_v46, %v727_v55 }
 0x440   : > { %v731_v56 = vpop.xlane.xlu1 %730 }
 0x441   : > { %v732_v58 = vmul.f32 0.03125, %v731_v56 }
 0x443   : > { %v734_v59 = vsub.f32 %v732_v58, %v733_v57 }
 0x445   : > { %v735_v60 = vmax.f32 %v734_v59, 0.0 }
 0x447   : > { %v737_v61 = vadd.f32 1e-05, %v735_v60 }
 0x449   : > { %1241 = vrsqrt.f32 %v737_v61 }
 0x453   : > { %v1242_v63 = vpop.eup %1241 }
 0x454   : > { %v739_v2 = vmul.f32 %v1242_v63, %v736_v62 }
 0x456   : > { %v748_v3 = vmul.f32 %v1083_v1, %v739_v2 }
 0x458   : > { %v757_v4 = vadd.f32 %v1085_v0, %v748_v3 }
 0x45a   : > { %v758_v5 = vpack.c.bf16 %v757_v4, %v757_v4  ;;  %v825_v6 = vsel %vm574_vm3, %v757_v4, 0.0 }
 0x45b   : > { %v826_v7 = vrot.slane %v825_v6, 4 }
 0x45c   : > { %1139 = vmatmul.mubr.msk.bf16.vlgmr.msra.gmra.mrb[4].mxu1 %vm574_vm3, %v758_v5 }
 0x45d   : > { %v827_v8 = vadd.f32 %v826_v7, %v825_v6 }
 0x45f   : > { %v828_v9 = vrot.slane %v827_v8, 2 }
 0x461   : > { %v829_v10 = vadd.f32 %v828_v9, %v827_v8 }
 0x463   : > { %v830_v11 = vrot.slane %v829_v10, 1 }
 0x465   : > { %v831_v12 = vadd.f32 %v830_v11, %v829_v10 }
 0x467   : > { %v833_v13 = vmul.f32 0.125, %v831_v12 }
 0x469   : > { %v834_v14 = vpack.c.bf16 %v833_v13, %v833_v13 }
 0x46b   : > { %1147 = vmatmul.mubr.msk.bf16.vlgmr.msra.gmra.mrb[8].mxu0 %vm574_vm3, %v834_v14 }
 0x52f   : > { %v819_v16 = vpop.f32.mrb[4].mxu1 }
 0x530   : > { %v820_v17 = vadd.f32 %v1086_v15, %v819_v16  ;;  %v1140_v18 = vpop.f32.mrb[5].mxu1 }
 0x531   : > { %v822_v19 = vpop.f32.mrb[6].mxu1 }
 0x532   : > { %v1141_v20 = vpop.f32.mrb[7].mxu1  ;;  %895 = vst.msk [vmem:[%s450_s26] sm:$0xff] %vm574_vm3, %v820_v17 }
 0x533   : > { %1340 = shalt.err (!%p1337_p9)
}
 0x534   : > { %s1341_s21 = scalar_lea.hbm %s1731_s12, 128  ;;  %s1345_s16 = scalar_lea.hbm %s1823_s11, 256 }
 0x535   : > { %p1342_p2 = scmp.ne.s32.totalorder %s1731_s12, %s1341_s21  ;;  %p1346_p5 = scmp.lt.u32.totalorder %s1731_s12, %s1823_s11 }
 0x536   : > { %p1347_p10 = scmp.lt.u32.totalorder %s1345_s16, %s1341_s21  ;;  %p1349_p12 = scmp.lt.u32.totalorder %s1341_s21, %s1731_s12 }
 0x537   : > { %p1343_p3 = pnand %p1342_p2, %p1853_p7 }
 0x538   : > { %p1348_p4 = por %p1347_p10, %p1346_p5 }
 0x539   : > { %p1344_p0 = pneg %p1343_p3 }
 0x53a   : > { %p1350_p8 = por %p1349_p12, %p1348_p4 }
 0x53c   : > { %p1351_p11 = pnand %p1350_p8, %p1344_p0 }
 0x53e   : > { %1354 = shalt.err (!%p1351_p11)
}
 0x53f   : > { %1162 = dma.vmem_to_hbm [thread:$0]  (%p1853_p7), %s1733_s23, 128, %s1731_s12, %s903_s10   ;;  %v896_v21 = vlaneseq  ;;  %v889_v25 = vpop.f32.mrb[8].mxu0 }
 0x540   : > { %s1854_s15 = sld [smem:[#allocation21_spill]]  ;;  %v1148_v27 = vpop.f32.mrb[9].mxu0  ;;  %s457_s18 = scalar_lea.vmem [#allocation9], %s1066_s30 }
 0x541   : > { %v897_v22 = vshrl.u32 %v896_v21, 7  ;;  %v892_v28 = vpop.f32.mrb[10].mxu0  ;;  %s934_s28 = sshll.u32 %s457_s18, 4  ;;  %s1855_s10 = sld [smem:[#allocation22_spill]]  ;;  %s1770_s28 = int_to_ptr.vmem [resolvable:$true] %s934_s28 }
 0x542   : > { %v1149_v30 = vpop.f32.mrb[11].mxu0  ;;  %s908_s24 = scalar_lea.sflag [#allocation10], %s1717_s27  ;;  %s1355_s29 = scalar_lea.vmem %s1770_s28, 128 }
 0x543   : > { %v898_v24 = vsub.s32 0, %v897_v22  ;;  %p1356_p13 = scmp.ne.s32.totalorder %s1770_s28, %s1355_s29  ;;  %s1441_s30 = smov [#allocation9]  }
 0x544   : > { %s1359_s25 = sshll.u32 %s1441_s30, 4  ;;  %s1360_s25 = int_to_ptr.vmem [resolvable:$false] %s1359_s25 }
 0x545   : > { %p1357_p1 = pnand %p1356_p13, %p1853_p7  ;;  %s1361_s16 = scalar_lea.vmem %s1360_s25, 256 }
 0x546   : > { %v839_v23 = vld [vmem:[%s1854_s15] sm:$0x1]  ;;  %p1362_p9 = scmp.lt.s32.totalorder %s1770_s28, %s1360_s25  ;;  %p1363_p2 = scmp.lt.s32.totalorder %s1361_s16, %s1355_s29 }
 0x547   : > { %v890_v26 = vadd.f32 %v889_v25, %v839_v23  ;;  %s1768_s21 = scalar_lea.hbm %s1855_s10, %s1095_s19  ;;  %p1358_p6 = pneg %p1357_p1 }
 0x548   : > { %p1364_p3 = por %p1363_p2, %p1362_p9 }
 0x549   : > { %v899_v29 = vrot.slane %v890_v26, %v898_v24 }
 0x54a   : > { %p1365_p0 = pnand %p1364_p3, %p1358_p6 }
 0x54b   : > { %v900_v31 = vadd.f32 %v899_v29, %v820_v17 }
 0x54d   : > { %901 = vst.msk [vmem:[%s457_s18] sm:$0xff] %vm574_vm3, %v900_v31 }
 0x54e   : > { %1368 = shalt.err (!%p1365_p0)
}
 0x54f   : > { %s1369_s27 = scalar_lea.hbm %s1768_s21, 128  ;;  %s1373_s20 = scalar_lea.hbm %s1855_s10, 256 }
 0x550   : > { %p1370_p5 = scmp.ne.s32.totalorder %s1768_s21, %s1369_s27  ;;  %p1374_p12 = scmp.lt.u32.totalorder %s1768_s21, %s1855_s10 }
 0x551   : > { %p1375_p8 = scmp.lt.u32.totalorder %s1373_s20, %s1369_s27  ;;  %p1377_p13 = scmp.lt.u32.totalorder %s1369_s27, %s1768_s21 }
 0x552   : > { %p1371_p10 = pnand %p1370_p5, %p1853_p7 }
 0x553   : > { %p1376_p11 = por %p1375_p8, %p1374_p12 }
 0x554   : > { %p1372_p4 = pneg %p1371_p10 }
 0x555   : > { %p1378_p1 = por %p1377_p13, %p1376_p11 }
 0x557   : > { %p1379_p6 = pnand %p1378_p1, %p1372_p4 }
 0x559   : > { %1382 = shalt.err (!%p1379_p6)
}
 0x55a   : > { %1163 = dma.vmem_to_hbm [thread:$0]  (%p1853_p7), %s1770_s28, 128, %s1768_s21, %s908_s24  }
 0x55b PF: > { %s1856_s15 = sld [smem:[#allocation17_spill]]  ;;  %s1857_s18 = sld [smem:[#allocation15_spill]] }
 0x55c   : > { %s1858_s23 = sld [smem:[#allocation20_spill]] }
 0x561   : > { %p1189_p9 = scmp.ge.s32.totalorder %s1856_s15, 2  ;;  %s946_s12 = sand.u32 1, %s1857_s18  }
 0x562   : > { %p1859_p2 = scmp.ne.s32.totalorder %s1858_s23, 0  ;;  %s947_s29 = scalar_lea.sflag [#allocation4], %s946_s12 }
 0x564   : > { %p1177_p3 = pnand %p1189_p9, %p1859_p2 }
 0x566   : > { %1408 = dma.done.wait (!%p1177_p3), %s947_s29, 128  }
 0x567   : > { %1410 = vsyncadd (!%p1177_p3), %s947_s29, 4294967168  ;;  %s956_s30 = scalar_lea.sflag [#allocation10], %s946_s12 }
 0x568   : > { %1412 = dma.done.wait (!%p1177_p3), %s956_s30, 128  }
 0x569   : > { %1414 = vsyncadd (!%p1177_p3), %s956_s30, 4294967168  ;;  %s1860_s24 = sld [smem:[#allocation18_spill]]  ;;  %s1861_s13 = sld [smem:[#allocation16_spill]] }
 0x56a   : > { %s1862_s23 = sld [smem:[#allocation19_spill]]  ;;  %s1863_s21 = smov %s1421_s22 }
 0x56f   : > { %p28_p7 = scmp.ge.s32.totalorder %s1860_s24, 4   ;;  %s1864_s22 = smov %s1861_s13 }
 0x571   :  { %30 = sbr.rel (!%p28_p7) target bundleno = 10 (0xa), region = 133 }
 0x578   :  { %961 = vsyncpa [#allocation3], 1 }
 0x579   :  { %963 = vsyncpa [#allocation3 + $0x1], 1 }
 0x57a   :  { %964 = vsyncpa [#allocation6], 1 }
 0x57b   :  { %965 = vsyncpa [#allocation4], 1 }
 0x57c   :  { %967 = vsyncpa [#allocation4 + $0x1], 1 }
 0x57d   :  { %968 = vsyncpa [#allocation10], 1 }
 0x57e   :  { %970 = vsyncpa [#allocation10 + $0x1], 1 }

</bundles_post_ra>
